<compile_context>
chip_gen: v6e
topology: v6e:2x2x1
jax: 0.10.0
libtpu: 0.0.40
codegen_flags: <defaults>
</compile_context>

<pallas_src>
import functools

import jax
import jax.numpy as jnp
from jax.experimental import pallas as pl
from jax.experimental.pallas import tpu as pltpu


def _round_up(n: int, m: int) -> int:
    return ((n + m - 1) // m) * m


def lr_kernel(x_ref, w_ref, b_ref, o_ref):
    # x_ref: (F, TB) VMEM, batch on lanes
    # w_ref: (F,) SMEM     b_ref: (1,) SMEM
    # o_ref: (1, TB) VMEM, lane-dense output slab
    x = x_ref[...]                                   # [F, TB] f32
    f = x.shape[0]
    z = x[0:1, :] * w_ref[0]                         # scalar-broadcast VPU muls
    for k in range(1, f):                            # F == 5: fully unrolled
        z = z + x[k:k + 1, :] * w_ref[k]
    z = z + b_ref[0]
    # sigmoid(z) = 1 / (1 + exp(-z)); exp goes to the EUP slot.
    o_ref[...] = pl.reciprocal(1.0 + jnp.exp(-z), approx=False).astype(o_ref.dtype)


@functools.partial(jax.jit, static_argnames=("block_b",))
def lr_forward(x, weight, bias, *, block_b: int = 65536):
    """x: [B, 5], weight: [1, 5] (PyTorch layout), bias: [1]. Returns [B, 1] f32."""
    B, F = x.shape

    # Batch-on-lanes: [B, F] -> [F, B] so 128 consecutive samples share one vreg.
    xt = jnp.asarray(x, jnp.float32).T               # [F, B]

    # Tile size: multiple of 128 lanes, capped by block_b, never larger than needed.
    tb = min(_round_up(block_b, 128), _round_up(B, 128))
    # Keep at least 2 blocks when the batch allows it (v7x has 2 TensorCores).
    if B > 2 * 128 and pl.cdiv(B, tb) < 2:
        tb = _round_up(pl.cdiv(B, 2), 128)
    grid = (pl.cdiv(B, tb),)                         # ragged last block is masked

    w_s = weight.reshape(F).astype(jnp.float32)      # [F] -> SMEM scalars
    b_s = bias.reshape(1).astype(jnp.float32)        # [1] -> SMEM scalar

    out = pl.pallas_call(
        lr_kernel,
        out_shape=jax.ShapeDtypeStruct((1, B), jnp.float32),
        grid=grid,
        in_specs=[
            pl.BlockSpec((F, tb), lambda i: (0, i)),              # x^T tile
            pl.BlockSpec(memory_space=pltpu.MemorySpace.SMEM),    # weights
            pl.BlockSpec(memory_space=pltpu.MemorySpace.SMEM),    # bias
        ],
        out_specs=pl.BlockSpec((1, tb), lambda i: (0, i)),
        compiler_params=pltpu.CompilerParams(
            dimension_semantics=("parallel",),
            vmem_limit_bytes=32 * 1024 * 1024,
        ),
    )(xt, w_s, b_s)

    # (1, B) -> (B, 1): row-major reshape, layout-preserving (free).
    return out.reshape(B, 1)


if __name__ == "__main__":
    key = jax.random.PRNGKey(0)
    kx, kw, kb, kx2 = jax.random.split(key, 4)

    B, IN, OUT = 8, 5, 1
    x = jax.random.normal(kx, (B, IN), dtype=jnp.float32)

    # Deterministic init mirroring nn.Linear's uniform(-1/sqrt(5), 1/sqrt(5))
    bound = 1.0 / jnp.sqrt(jnp.float32(IN))
    weight = jax.random.uniform(kw, (OUT, IN), minval=-bound, maxval=bound, dtype=jnp.float32)
    bias = jax.random.uniform(kb, (OUT,), minval=-bound, maxval=bound, dtype=jnp.float32)

    out = lr_forward(x, weight, bias)
    jax.block_until_ready(out)
    ref = jax.nn.sigmoid(x @ weight.T + bias)
    assert out.shape == (B, OUT)
    assert jnp.allclose(out, ref, atol=1e-5, rtol=1e-5)

    # Exercise the multi-block pipelined grid + ragged (non-multiple-of-tile) batch.
    B2 = 300
    x2 = jax.random.normal(kx2, (B2, IN), dtype=jnp.float32)
    out2 = lr_forward(x2, weight, bias, block_b=128)
    jax.block_until_ready(out2)
    ref2 = jax.nn.sigmoid(x2 @ weight.T + bias)
    assert out2.shape == (B2, OUT)
    assert jnp.allclose(out2, ref2, atol=1e-5, rtol=1e-5)

    print("KERNEL_OK")
</pallas_src>

<mosaic_0001>
module attributes {stable_mosaic.version = 11 : i64} {
  func.func @lr_kernel(%arg0: i32, %arg1: memref<5x128xf32, #tpu.memory_space<vmem>>, %arg2: memref<5xf32, #tpu.memory_space<smem>>, %arg3: memref<1xf32, #tpu.memory_space<smem>>, %arg4: memref<1x128xf32, #tpu.memory_space<vmem>>) attributes {dimension_semantics = [#tpu.dimension_semantics<parallel>], iteration_bounds = array<i64: 1>, scalar_prefetch = 0 : i64, scratch_operands = 0 : i64, tpu.core_type = #tpu.core_type<tc>, window_params = [{transform_indices = @transform_0, window_bounds = array<i64: 5, 128>}, {transform_indices = @transform_1, window_bounds = array<i64: 5>}, {transform_indices = @transform_2, window_bounds = array<i64: 1>}, {transform_indices = @transform_3, window_bounds = array<i64: 1, 128>}]} {
    %c0 = arith.constant 0 : index
    %c0_0 = arith.constant 0 : index
    %0 = vector.load %arg1[%c0, %c0_0] : memref<5x128xf32, #tpu.memory_space<vmem>>, vector<5x128xf32>
    %1 = vector.extract_strided_slice %0 {offsets = [0, 0], sizes = [1, 128], strides = [1, 1]} : vector<5x128xf32> to vector<1x128xf32>
    %c0_1 = arith.constant 0 : index
    %2 = memref.load %arg2[%c0_1] : memref<5xf32, #tpu.memory_space<smem>>
    %3 = vector.broadcast %2 : f32 to vector<1x128xf32>
    %4 = arith.mulf %1, %3 : vector<1x128xf32>
    %5 = vector.extract_strided_slice %0 {offsets = [1, 0], sizes = [1, 128], strides = [1, 1]} : vector<5x128xf32> to vector<1x128xf32>
    %c1 = arith.constant 1 : index
    %6 = memref.load %arg2[%c1] : memref<5xf32, #tpu.memory_space<smem>>
    %7 = vector.broadcast %6 : f32 to vector<1x128xf32>
    %8 = arith.mulf %5, %7 : vector<1x128xf32>
    %9 = arith.addf %4, %8 : vector<1x128xf32>
    %10 = vector.extract_strided_slice %0 {offsets = [2, 0], sizes = [1, 128], strides = [1, 1]} : vector<5x128xf32> to vector<1x128xf32>
    %c2 = arith.constant 2 : index
    %11 = memref.load %arg2[%c2] : memref<5xf32, #tpu.memory_space<smem>>
    %12 = vector.broadcast %11 : f32 to vector<1x128xf32>
    %13 = arith.mulf %10, %12 : vector<1x128xf32>
    %14 = arith.addf %9, %13 : vector<1x128xf32>
    %15 = vector.extract_strided_slice %0 {offsets = [3, 0], sizes = [1, 128], strides = [1, 1]} : vector<5x128xf32> to vector<1x128xf32>
    %c3 = arith.constant 3 : index
    %16 = memref.load %arg2[%c3] : memref<5xf32, #tpu.memory_space<smem>>
    %17 = vector.broadcast %16 : f32 to vector<1x128xf32>
    %18 = arith.mulf %15, %17 : vector<1x128xf32>
    %19 = arith.addf %14, %18 : vector<1x128xf32>
    %20 = vector.extract_strided_slice %0 {offsets = [4, 0], sizes = [1, 128], strides = [1, 1]} : vector<5x128xf32> to vector<1x128xf32>
    %c4 = arith.constant 4 : index
    %21 = memref.load %arg2[%c4] : memref<5xf32, #tpu.memory_space<smem>>
    %22 = vector.broadcast %21 : f32 to vector<1x128xf32>
    %23 = arith.mulf %20, %22 : vector<1x128xf32>
    %24 = arith.addf %19, %23 : vector<1x128xf32>
    %c0_2 = arith.constant 0 : index
    %25 = memref.load %arg3[%c0_2] : memref<1xf32, #tpu.memory_space<smem>>
    %26 = vector.broadcast %25 : f32 to vector<1x128xf32>
    %27 = arith.addf %24, %26 : vector<1x128xf32>
    %cst = arith.constant 0.000000e+00 : f32
    %28 = vector.broadcast %cst : f32 to vector<1x128xf32>
    %29 = arith.subf %28, %27 : vector<1x128xf32>
    %30 = math.exp %29 : vector<1x128xf32>
    %cst_3 = arith.constant 1.000000e+00 : f32
    %31 = vector.broadcast %cst_3 : f32 to vector<1x128xf32>
    %32 = arith.addf %31, %30 : vector<1x128xf32>
    %33 = tpu.reciprocal %32 : vector<1x128xf32> -> vector<1x128xf32>
    %c0_4 = arith.constant 0 : index
    %c0_5 = arith.constant 0 : index
    %34 = vector.load %arg4[%c0_4, %c0_5] : memref<1x128xf32, #tpu.memory_space<vmem>>, vector<1x128xf32>
    tpu.vector_store %arg4[%c0_4, %c0_5], %33 {strides = array<i32>} : memref<1x128xf32, #tpu.memory_space<vmem>>, vector<1x128xf32>,
    return
  }
  func.func @transform_0(%arg0: i32) -> (i32, i32) {
    %c0_i32 = arith.constant 0 : i32
    %c0_i32_0 = arith.constant 0 : i32
    return %c0_i32, %arg0 : i32, i32
  }
  func.func @transform_1(%arg0: i32) -> i32 {
    %c0_i32 = arith.constant 0 : i32
    %c0_i32_0 = arith.constant 0 : i32
    return %c0_i32 : i32
  }
  func.func @transform_2(%arg0: i32) -> i32 {
    %c0_i32 = arith.constant 0 : i32
    %c0_i32_0 = arith.constant 0 : i32
    return %c0_i32 : i32
  }
  func.func @transform_3(%arg0: i32) -> (i32, i32) {
    %c0_i32 = arith.constant 0 : i32
    %c0_i32_0 = arith.constant 0 : i32
    return %c0_i32, %arg0 : i32, i32
  }
}

</mosaic_0001>

<bundles_post_ra>
// kernel: lr_forward.1
= control target key start
LH: loop header
LB: loop body
LE: loop exit
PB: predicated region body
PF: predicated region fallthrough
CT: control target
= control target key end

     0   :  { %9 = vsyncpa [#allocation5], 0  ;;  %s165_s0 = inlined_call_operand.vmem [shape: f32[5,8], index: 0, kind: input, shape index: {}]   ;;  %s166_s1 = inlined_call_operand.vmem [shape: f32[5], index: 1, kind: input, shape index: {}]   ;;  %s167_s2 = inlined_call_operand.<no memory space> [shape: f32[1], index: 2, kind: input, shape index: {}]   ;;  %s168_s3 = inlined_call_operand.hbm [shape: f32[1,8], index: 3, kind: output, shape index: {}]  }
   0x1   :  { %10 = vsyncpa [#allocation4], 0  ;;  %s19_s14 = sshll.u32 %s166_s1, 4  ;;  %s20_s14 = int_to_ptr.vmem [resolvable:$true] %s19_s14 }
   0x2   :  { %s95_s15 = scalar_lea.vmem %s20_s14, 16  ;;  %p100_p1 = scmp.lt.s32.totalorder %s20_s14, %s20_s14 }
   0x3   :  { %p96_p0 = scmp.ne.s32.totalorder %s20_s14, %s95_s15  ;;  %p101_p2 = scmp.lt.s32.totalorder %s95_s15, %s95_s15 }
   0x5   :  { %p102_p3 = por %p101_p2, %p100_p1 }
   0x7   :  { %p103_p4 = pnand %p102_p3, %p96_p0 }
   0x9   :  { %106 = shalt.err (!%p103_p4)
}
   0xa   :  { %s131_s16 = smov [#allocation3]  }
   0xb   :  { %22 = dma.vmem_to_smem %s20_s14, 16, %s131_s16, [#allocation5]  }
   0xc   :  { %127 = dma.done.wait [#allocation5], 16  }
   0xd   :  { %128 = vsyncadd [#allocation5], 4294967280 }
   0xe   :  { %28 = sfence }
   0xf   :  { %s30_s17 = sld [smem:[#allocation3]]  ;;  %v29_v0 = vld [vmem:[%s165_s0] sm:$0x1f]  ;;  %v62_v18 = vstv %s167_s2  ;;  %s132_s0 = smov [#allocation6]  }
  0x10   :  { %s85_s18 = sld [smem:[#allocation3 + $0x1]]  ;;  %s76_s25 = sshll.u32 %s132_s0, 4  ;;  %s77_s25 = int_to_ptr.vmem [resolvable:$true] %s76_s25 }
  0x11   :  { %s86_s19 = sld [smem:[#allocation3 + $0x2]]  ;;  %s107_s26 = scalar_lea.vmem %s77_s25, 16 }
  0x12   :  { %s87_s20 = sld [smem:[#allocation3 + $0x3]]  ;;  %p108_p5 = scmp.ne.s32.totalorder %s77_s25, %s107_s26 }
  0x13   :  { %s88_s21 = sld [smem:[#allocation3 + $0x4]]  ;;  %s111_s27 = scalar_lea.vmem %s77_s25, 32 }
  0x14   :  { %p112_p6 = scmp.lt.s32.totalorder %s77_s25, %s77_s25  ;;  %p113_p7 = scmp.lt.s32.totalorder %s111_s27, %s107_s26 }
  0x15   :  { %v31_v1 = vstv %s30_s17 }
  0x16   :  { %v34_v2 = vstv %s85_s18  ;;  %v32_v3 = vmul.f32 %v31_v1, %v29_v0  ;;  %p114_p8 = por %p113_p7, %p112_p6 }
  0x17   :  { %v35_v4 = vmul.f32 %v34_v2, %v29_v0  ;;  %v41_v5 = vstv %s86_s19 }
  0x18   :  { %v42_v6 = vmul.f32 %v41_v5, %v29_v0  ;;  %v48_v7 = vstv %s87_s20  ;;  %p115_p9 = pnand %p114_p8, %p108_p5 }
  0x19   :  { %v37_v8 = vrot.slane %v35_v4, 1  ;;  %v49_v9 = vmul.f32 %v48_v7, %v29_v0  ;;  %v55_v10 = vstv %s88_s21 }
  0x1a   :  { %v44_v11 = vrot.slane %v42_v6, 2  ;;  %v56_v12 = vmul.f32 %v55_v10, %v29_v0 }
  0x1b   :  { %v39_v13 = vadd.f32 %v37_v8, %v32_v3  ;;  %v51_v14 = vrot.slane %v49_v9, 3 }
  0x1c   :  { %v58_v16 = vrot.slane %v56_v12, 4 }
  0x1d   :  { %v46_v15 = vadd.f32 %v44_v11, %v39_v13 }
  0x1f   :  { %v53_v17 = vadd.f32 %v51_v14, %v46_v15 }
  0x21   :  { %v60_v19 = vadd.f32 %v58_v16, %v53_v17 }
  0x23   :  { %v63_v20 = vadd.f32 %v62_v18, %v60_v19 }
  0x25   :  { %v64_v21 = vsub.f32 0.0, %v63_v20 }
  0x27   :  { %v65_v22 = vmul.f32 1.442695, %v64_v21 }
  0x29   :  { %91 = vpow2.f32 %v65_v22 }
  0x36   :  { %v92_v23 = vpop.eup %91 }
  0x37   :  { %v67_v24 = vadd.f32 1.0, %v92_v23 }
  0x39   :  { %93 = vrcp.f32 %v67_v24 }
  0x46   :  { %v94_v25 = vpop.eup %93 }
  0x47   :  { %69 = vst [vmem:[#allocation6] sm:$0x1] %v94_v25 }
  0x48   :  { %118 = shalt.err (!%p115_p9)
}
  0x49   :  { %79 = dma.vmem_to_hbm [thread:$0]  %s77_s25, 16, %s168_s3, [#allocation4]  }
  0x4a   :  { %129 = dma.done.wait [#allocation4], 16  }
  0x4b   :  { %130 = vsyncadd [#allocation4], 4294967280 }
  0x4c   :  { %83 = vsyncpa [#allocation4], 1 }
  0x4d   :  { %84 = vsyncpa [#allocation5], 1 }

</bundles_post_ra>
